<compile_context>
chip_gen: v7x
topology: tpu7x:2x2x1
jax: 0.10.0
libtpu: 0.0.40
codegen_flags: <defaults>
</compile_context>

<pallas_src>
import jax
import jax.numpy as jnp
from jax.experimental import pallas as pl
from jax.experimental.pallas import tpu as pltpu


def _round_up(x, m):
    return (x + m - 1) // m * m


# ----------------------------------------------------------------------------
# Fused kernel: single im2col conv matmul (all branches) + bias + ReLU
#               + masked max-over-time + final Linear, one batch tile per step.
# ----------------------------------------------------------------------------
def _fused_textcnn_kernel(x_ref, w_ref, b_ref, mask_ref, ffw_ref, ffb_ref,
                          out_ref):
    # x_ref   : (b_blk, l_conv, K_pad)  bf16 im2col embeddings
    # w_ref   : (K_pad, C_pad)          bf16 stacked conv weights (all branches)
    # b_ref   : (1, C_pad)              f32 stacked conv biases
    # mask_ref: (l_conv, C_pad)         f32, 1.0 where (position, channel) valid
    # ffw_ref : (C_pad, O_pad)          bf16 final linear weight
    # ffb_ref : (1, O_pad)              f32 final linear bias
    # out_ref : (b_blk, O_pad)          f32 logits (lane-dense padded)
    b_blk, l_conv, k_pad = x_ref.shape
    c_pad = w_ref.shape[1]

    # Single dense-K MXU matmul (batch folded into M), f32 accumulation.
    x = x_ref[...].reshape(b_blk * l_conv, k_pad)
    acc = jnp.dot(x, w_ref[...], preferred_element_type=jnp.float32)

    # Bias + ReLU (f32 VPU), then zero out invalid (position, channel) slots.
    # Post-ReLU every valid value is >= 0, so a masked 0 can never win the max.
    acc = jnp.maximum(acc + b_ref[...], 0.0)
    acc = acc.reshape(b_blk, l_conv, c_pad) * mask_ref[...]
    feats = jnp.max(acc, axis=1)                      # (b_blk, C_pad)

    # Fused final linear; dropout is identity at inference time.
    out_ref[...] = (
        jnp.dot(feats.astype(jnp.bfloat16), ffw_ref[...],
                preferred_element_type=jnp.float32)
        + ffb_ref[...]
    )


def _choose_b_blk(B, l_conv, k_pad):
    """Batch-tile size: fill the MXU, respect v7x VMEM, keep >= 2 grid steps."""
    b8 = _round_up(B, 8)
    # Aim for M = b_blk * l_conv ~ 512 rows per conv matmul (256-wide MXU).
    b_blk = _round_up(max(8, -(-512 // l_conv)), 8)
    b_blk = min(b_blk, b8)                 # never pad batch beyond need
    # v7x has 2 TensorCores: keep >= 2 'parallel' grid steps when batch allows.
    if b8 >= 16 and b8 <= b_blk:
        b_blk = _round_up(-(-b8 // 2), 8)
    # Cap the double-buffered bf16 input tile (v7x: only 64 MiB VMEM per core).
    while b_blk > 8 and 2 * b_blk * l_conv * k_pad * 2 > 24 * 1024 * 1024:
        b_blk -= 8
    return b_blk


# ----------------------------------------------------------------------------
# Forward pass wrapper
# ----------------------------------------------------------------------------
def text_cnn_forward(token_ids, params, *, b_blk=None):
    emb_table = params["embedding"]      # (V, D)
    conv_ws = params["conv_w"]           # list of (h_i, D, C_i)
    conv_bs = params["conv_b"]           # list of (1, C_i)
    ff_w = params["ff_w"]                # (sum(C_i), O)
    ff_b = params["ff_b"]                # (1, O)

    B, L = token_ids.shape
    D = emb_table.shape[1]
    heights = tuple(int(w.shape[0]) for w in conv_ws)
    channels = tuple(int(w.shape[2]) for w in conv_ws)
    h_max, h_min = max(heights), min(heights)
    C_total = sum(channels)
    O = ff_w.shape[1]

    # Lane-dense / MXU-friendly padded sizes.
    K = h_max * D                                   # im2col feature width
    K_pad = _round_up(K, 128)
    C_pad = _round_up(C_total, 128)
    O_pad = _round_up(O, 128)
    l_conv = _round_up(L - h_min + 1, 8)            # conv positions computed

    if b_blk is None:
        b_blk = _choose_b_blk(B, l_conv, K_pad)
    b_blk = max(8, _round_up(b_blk, 8))
    B_pad = _round_up(B, b_blk)

    # im2col gather: x[b, t, s*D + d] = emb_table[token_ids[b, t+s], d].
    # Out-of-range (t+s >= L) entries only ever meet zero weight rows or masked
    # positions, so clamping the gather index is safe.
    # TODO(synk): for large vocabularies move this gather in-kernel
    # (PrefetchScalarGridSpec token-id prefetch + per-row DMA gather) to remove
    # the HBM round trip of the materialized im2col tensor.
    pos = jnp.minimum(jnp.arange(l_conv)[:, None] + jnp.arange(h_max)[None, :],
                      L - 1)                                   # (l_conv, h_max)
    tok = token_ids[:, pos]                                    # (B, l_conv, h_max)
    x = jnp.take(emb_table.astype(jnp.float32), tok, axis=0)   # (B, l_conv, h_max, D)
    x = x.reshape(B, l_conv, K)
    x = jnp.pad(x, ((0, B_pad - B), (0, 0), (0, K_pad - K))).astype(jnp.bfloat16)

    # Stack all conv branches: rows s*D..(s+1)*D-1 hold shift s of each branch
    # (zero rows for shifts >= h_i), channels concatenated then 128-padded.
    w_blocks, b_blocks, mask_cols = [], [], []
    for w_i, b_i, h_i, c_i in zip(conv_ws, conv_bs, heights, channels):
        w_full = jnp.pad(w_i.astype(jnp.float32),
                         ((0, h_max - h_i), (0, 0), (0, 0)))   # (h_max, D, c_i)
        w_blocks.append(w_full.reshape(K, c_i))
        b_blocks.append(b_i.astype(jnp.float32).reshape(1, c_i))
        l_out_i = L - h_i + 1
        col = (jnp.arange(l_conv) < l_out_i).astype(jnp.float32)
        mask_cols.append(jnp.tile(col[:, None], (1, c_i)))
    w_comb = jnp.pad(jnp.concatenate(w_blocks, axis=1),
                     ((0, K_pad - K), (0, C_pad - C_total))).astype(jnp.bfloat16)
    b_comb = jnp.pad(jnp.concatenate(b_blocks, axis=1),
                     ((0, 0), (0, C_pad - C_total)))
    mask = jnp.pad(jnp.concatenate(mask_cols, axis=1),
                   ((0, 0), (0, C_pad - C_total)))
    ffw_pad = jnp.pad(ff_w.astype(jnp.float32),
                      ((0, C_pad - C_total), (0, O_pad - O))).astype(jnp.bfloat16)
    ffb_pad = jnp.pad(ff_b.astype(jnp.float32).reshape(1, O),
                      ((0, 0), (0, O_pad - O)))

    # VMEM budget estimate: double-buffered tiles + invariants + f32 accumulator.
    tile_b = b_blk * l_conv * K_pad * 2 + b_blk * O_pad * 4
    inv_b = (K_pad * C_pad * 2 + C_pad * 4 + l_conv * C_pad * 4
             + C_pad * O_pad * 2 + O_pad * 4)
    acc_b = b_blk * l_conv * C_pad * 4
    vmem_limit = int(min(48 * 1024 * 1024,
                         max(16 * 1024 * 1024, 2 * (tile_b + inv_b) + 2 * acc_b)))

    grid = (B_pad // b_blk,)
    out = pl.pallas_call(
        _fused_textcnn_kernel,
        out_shape=jax.ShapeDtypeStruct((B_pad, O_pad), jnp.float32),
        grid_spec=pltpu.PrefetchScalarGridSpec(
            num_scalar_prefetch=0,
            grid=grid,
            in_specs=[
                pl.BlockSpec((b_blk, l_conv, K_pad), lambda b: (b, 0, 0)),
                # Grid-invariant operands: constant index_map -> Pallas skips
                # re-DMA across steps (pipeline_mode=pl.Buffered(1) could also
                # halve their VMEM; left at default for portability).
                pl.BlockSpec((K_pad, C_pad), lambda b: (0, 0)),
                pl.BlockSpec((1, C_pad), lambda b: (0, 0)),
                pl.BlockSpec((l_conv, C_pad), lambda b: (0, 0)),
                pl.BlockSpec((C_pad, O_pad), lambda b: (0, 0)),
                pl.BlockSpec((1, O_pad), lambda b: (0, 0)),
            ],
            out_specs=pl.BlockSpec((b_blk, O_pad), lambda b: (b, 0)),
        ),
        compiler_params=pltpu.CompilerParams(
            dimension_semantics=("parallel",),   # batch tiles -> 2 TCs on v7x
            vmem_limit_bytes=vmem_limit,
        ),
    )(x, w_comb, b_comb, mask, ffw_pad, ffb_pad)

    return out[:B, :O]


# ----------------------------------------------------------------------------
# Pure-JAX reference (mirrors the PyTorch forward) for a correctness check.
# ----------------------------------------------------------------------------
def text_cnn_reference(token_ids, params):
    emb = jnp.take(params["embedding"], token_ids, axis=0)
    B, L, _ = emb.shape
    pooled = []
    for w, b in zip(params["conv_w"], params["conv_b"]):
        h, _, c = w.shape
        l_out = L - h + 1
        acc = jnp.zeros((B, l_out, c), jnp.float32)
        for s in range(h):
            acc = acc + jnp.einsum("bld,dc->blc", emb[:, s:s + l_out, :], w[s])
        acc = jax.nn.relu(acc + b)
        pooled.append(jnp.max(acc, axis=1))
    feats = jnp.concatenate(pooled, axis=1)
    return feats @ params["ff_w"] + params["ff_b"]


def init_params(key, vocab_size, d_word, filter_num, filter_heights, d_output):
    keys = jax.random.split(key, 4 + 2 * len(filter_num))
    params = {}
    params["embedding"] = (
        jax.random.normal(keys[0], (vocab_size, d_word), jnp.float32) * 0.1
    )
    conv_w, conv_b = [], []
    for i, (c, h) in enumerate(zip(filter_num, filter_heights)):
        # PyTorch conv weight is (C, 1, h, D); we store it as (h, D, C).
        conv_w.append(
            jax.random.normal(keys[1 + 2 * i], (h, d_word, c), jnp.float32) * 0.1
        )
        conv_b.append(
            jax.random.normal(keys[2 + 2 * i], (1, c), jnp.float32) * 0.1
        )
    params["conv_w"] = conv_w
    params["conv_b"] = conv_b
    f_total = sum(filter_num)
    params["ff_w"] = (
        jax.random.normal(keys[-2], (f_total, d_output), jnp.float32) * 0.1
    )
    params["ff_b"] = jax.random.normal(keys[-1], (1, d_output), jnp.float32) * 0.1
    return params


if __name__ == "__main__":
    # Small config consistent with the module.
    B, L = 2, 16
    vocab_size, d_word = 50, 32
    filter_num = (8, 8, 8)
    filter_heights = (2, 3, 4)
    d_output = 4

    key = jax.random.PRNGKey(0)
    k_tok, k_par = jax.random.split(key)
    token_ids = jax.random.randint(k_tok, (B, L), 0, vocab_size, dtype=jnp.int32)
    params = init_params(
        k_par, vocab_size, d_word, filter_num, filter_heights, d_output
    )

    logits = jax.jit(text_cnn_forward)(token_ids, params)
    jax.block_until_ready(logits)
    assert logits.shape == (B, d_output) and logits.dtype == jnp.float32

    ref = text_cnn_reference(token_ids, params)
    err = float(jnp.max(jnp.abs(logits - ref)))
    # bf16 matmul inputs / f32 accumulation: tolerance loosened vs pure-f32 ref.
    assert jnp.allclose(logits, ref, atol=2e-2, rtol=2e-2), err
    print("KERNEL_OK")
</pallas_src>

<mosaic_0001>
module attributes {stable_mosaic.version = 11 : i64} {
  func.func @_fused_textcnn_kernel(%arg0: i32, %arg1: memref<8x16x128xbf16, #tpu.memory_space<vmem>>, %arg2: memref<128x128xbf16, #tpu.memory_space<vmem>>, %arg3: memref<1x128xf32, #tpu.memory_space<vmem>>, %arg4: memref<16x128xf32, #tpu.memory_space<vmem>>, %arg5: memref<128x128xbf16, #tpu.memory_space<vmem>>, %arg6: memref<1x128xf32, #tpu.memory_space<vmem>>, %arg7: memref<8x128xf32, #tpu.memory_space<vmem>>) attributes {dimension_semantics = [#tpu.dimension_semantics<parallel>], iteration_bounds = array<i64: 1>, scalar_prefetch = 0 : i64, scratch_operands = 0 : i64, tpu.core_type = #tpu.core_type<tc>, window_params = [{transform_indices = @transform_0, window_bounds = array<i64: 8, 16, 128>}, {pipeline_mode = #tpu.pipeline_mode<synchronous>, transform_indices = @transform_1, window_bounds = array<i64: 128, 128>}, {pipeline_mode = #tpu.pipeline_mode<synchronous>, transform_indices = @transform_2, window_bounds = array<i64: 1, 128>}, {pipeline_mode = #tpu.pipeline_mode<synchronous>, transform_indices = @transform_3, window_bounds = array<i64: 16, 128>}, {pipeline_mode = #tpu.pipeline_mode<synchronous>, transform_indices = @transform_4, window_bounds = array<i64: 128, 128>}, {pipeline_mode = #tpu.pipeline_mode<synchronous>, transform_indices = @transform_5, window_bounds = array<i64: 1, 128>}, {transform_indices = @transform_6, window_bounds = array<i64: 8, 128>}]} {
    %c0 = arith.constant 0 : index
    %c0_0 = arith.constant 0 : index
    %c0_1 = arith.constant 0 : index
    %0 = vector.load %arg1[%c0, %c0_0, %c0_1] : memref<8x16x128xbf16, #tpu.memory_space<vmem>>, vector<8x16x128xbf16>
    %1 = vector.shape_cast %0 : vector<8x16x128xbf16> to vector<128x128xbf16>
    %c0_2 = arith.constant 0 : index
    %c0_3 = arith.constant 0 : index
    %2 = vector.load %arg2[%c0_2, %c0_3] : memref<128x128xbf16, #tpu.memory_space<vmem>>, vector<128x128xbf16>
    %cst = arith.constant dense<0.000000e+00> : vector<128x128xf32>
    %3 = tpu.matmul %1, %2, %cst {dimension_numbers = #tpu.dot_dimension_numbers<[1], [0], [0], [1], [0, 0, 1, 1], [], []>} : vector<128x128xbf16>, vector<128x128xbf16>, vector<128x128xf32> -> vector<128x128xf32>
    %c0_4 = arith.constant 0 : index
    %c0_5 = arith.constant 0 : index
    %4 = vector.load %arg3[%c0_4, %c0_5] : memref<1x128xf32, #tpu.memory_space<vmem>>, vector<1x128xf32>
    %5 = vector.broadcast %4 : vector<1x128xf32> to vector<128x128xf32>
    %6 = arith.addf %3, %5 : vector<128x128xf32>
    %cst_6 = arith.constant 0.000000e+00 : f32
    %7 = vector.broadcast %cst_6 : f32 to vector<128x128xf32>
    %8 = arith.maximumf %6, %7 : vector<128x128xf32>
    %9 = vector.shape_cast %8 : vector<128x128xf32> to vector<8x16x128xf32>
    %c0_7 = arith.constant 0 : index
    %c0_8 = arith.constant 0 : index
    %10 = vector.load %arg4[%c0_7, %c0_8] : memref<16x128xf32, #tpu.memory_space<vmem>>, vector<16x128xf32>
    %11 = vector.shape_cast %10 : vector<16x128xf32> to vector<1x16x128xf32>
    %12 = vector.broadcast %11 : vector<1x16x128xf32> to vector<8x16x128xf32>
    %13 = arith.mulf %9, %12 : vector<8x16x128xf32>
    %cst_9 = arith.constant dense<0xFF800000> : vector<8x128xf32>
    %14 = vector.multi_reduction <maximumf>, %13, %cst_9 [1] : vector<8x16x128xf32> to vector<8x128xf32>
    %15 = arith.truncf %14 : vector<8x128xf32> to vector<8x128xbf16>
    %c0_10 = arith.constant 0 : index
    %c0_11 = arith.constant 0 : index
    %16 = vector.load %arg5[%c0_10, %c0_11] : memref<128x128xbf16, #tpu.memory_space<vmem>>, vector<128x128xbf16>
    %cst_12 = arith.constant dense<0.000000e+00> : vector<8x128xf32>
    %17 = tpu.matmul %15, %16, %cst_12 {dimension_numbers = #tpu.dot_dimension_numbers<[1], [0], [0], [1], [0, 0, 1, 1], [], []>} : vector<8x128xbf16>, vector<128x128xbf16>, vector<8x128xf32> -> vector<8x128xf32>
    %c0_13 = arith.constant 0 : index
    %c0_14 = arith.constant 0 : index
    %18 = vector.load %arg6[%c0_13, %c0_14] : memref<1x128xf32, #tpu.memory_space<vmem>>, vector<1x128xf32>
    %19 = vector.broadcast %18 : vector<1x128xf32> to vector<8x128xf32>
    %20 = arith.addf %17, %19 : vector<8x128xf32>
    %c0_15 = arith.constant 0 : index
    %c0_16 = arith.constant 0 : index
    %21 = vector.load %arg7[%c0_15, %c0_16] : memref<8x128xf32, #tpu.memory_space<vmem>>, vector<8x128xf32>
    tpu.vector_store %arg7[%c0_15, %c0_16], %20 {strides = array<i32>} : memref<8x128xf32, #tpu.memory_space<vmem>>, vector<8x128xf32>,
    return
  }
  func.func @transform_0(%arg0: i32) -> (i32, i32, i32) {
    %c0_i32 = arith.constant 0 : i32
    %c0_i32_0 = arith.constant 0 : i32
    %c0_i32_1 = arith.constant 0 : i32
    return %arg0, %c0_i32, %c0_i32_0 : i32, i32, i32
  }
  func.func @transform_1(%arg0: i32) -> (i32, i32) {
    %c0_i32 = arith.constant 0 : i32
    %c0_i32_0 = arith.constant 0 : i32
    %c0_i32_1 = arith.constant 0 : i32
    return %c0_i32, %c0_i32_0 : i32, i32
  }
  func.func @transform_2(%arg0: i32) -> (i32, i32) {
    %c0_i32 = arith.constant 0 : i32
    %c0_i32_0 = arith.constant 0 : i32
    %c0_i32_1 = arith.constant 0 : i32
    return %c0_i32, %c0_i32_0 : i32, i32
  }
  func.func @transform_3(%arg0: i32) -> (i32, i32) {
    %c0_i32 = arith.constant 0 : i32
    %c0_i32_0 = arith.constant 0 : i32
    %c0_i32_1 = arith.constant 0 : i32
    return %c0_i32, %c0_i32_0 : i32, i32
  }
  func.func @transform_4(%arg0: i32) -> (i32, i32) {
    %c0_i32 = arith.constant 0 : i32
    %c0_i32_0 = arith.constant 0 : i32
    %c0_i32_1 = arith.constant 0 : i32
    return %c0_i32, %c0_i32_0 : i32, i32
  }
  func.func @transform_5(%arg0: i32) -> (i32, i32) {
    %c0_i32 = arith.constant 0 : i32
    %c0_i32_0 = arith.constant 0 : i32
    %c0_i32_1 = arith.constant 0 : i32
    return %c0_i32, %c0_i32_0 : i32, i32
  }
  func.func @transform_6(%arg0: i32) -> (i32, i32) {
    %c0_i32 = arith.constant 0 : i32
    %c0_i32_0 = arith.constant 0 : i32
    return %arg0, %c0_i32 : i32, i32
  }
}

</mosaic_0001>

<bundles_post_ra>
// kernel: text_cnn_forward.1
= control target key start
LH: loop header
LB: loop body
LE: loop exit
PB: predicated region body
PF: predicated region fallthrough
CT: control target
= control target key end

     0   :  { %v631_v17 = vmov 0.0   ;;  %vm632_vm0 = vmmov 0   ;;  %vm393_vm1 = vcmask 1041409   ;;  %vm395_vm2 = vcmask 1042434   ;;  %s794_s1 = inlined_call_operand.vmem [shape: bf16[128,128], index: 1, kind: input, shape index: {}]   ;;  %s795_s0 = inlined_call_operand.vmem [shape: bf16[8,16,128], index: 0, kind: input, shape index: {}]   ;;  %s796_s4 = inlined_call_operand.vmem [shape: bf16[128,128], index: 4, kind: input, shape index: {}]   ;;  %s797_s2 = inlined_call_operand.vmem [shape: f32[1,128], index: 2, kind: input, shape index: {}]   ;;  %s798_s3 = inlined_call_operand.vmem [shape: f32[16,128], index: 3, kind: input, shape index: {}]   ;;  %s799_s5 = inlined_call_operand.vmem [shape: f32[1,128], index: 5, kind: input, shape index: {}]   ;;  %s800_s6 = inlined_call_operand.vmem [shape: f32[8,128], index: 6, kind: output, shape index: {}]  }
   0x1   :  { %v607_v0 = vld [vmem:[%s794_s1] sm:$0xff]   ;;  %v608_v1 = vld [vmem:[%s794_s1 + $0x8] sm:$0xff]   ;;  %v609_v2 = vld [vmem:[%s794_s1 + $0x10] sm:$0xff]   ;;  %585 = vmatprep.subr.bf16.mxu1 %v631_v17  ;;  %601 = vmatprep.mubr.msk.bf16.mxu1 %vm632_vm0, %v631_v17  ;;  %vm397_vm3 = vcmask 1043459   ;;  %vm399_vm4 = vcmask 1044484   ;;  %vm401_vm5 = vcmask 1045509  }
   0x2   :  { %553 = vmatprep.subr.bf16.mxu0 %v607_v0  ;;  %v610_v3 = vld [vmem:[%s794_s1 + $0x18] sm:$0xff]   ;;  %v615_v4 = vld [vmem:[%s795_s0] sm:$0xff]   ;;  %v612_v6 = vld [vmem:[%s794_s1 + $0x28] sm:$0xff]   ;;  %vm403_vm6 = vcmask 1046534   ;;  %vm405_vm7 = vcmask 1047559  }
   0x3   :  { %554 = vmatpush3.bf16.msra.mxu0 %v607_v0  ;;  %569 = vmatprep.mubr.bf16.mxu0 %v615_v4  ;;  %v611_v5 = vld [vmem:[%s794_s1 + $0x20] sm:$0xff]   ;;  %v613_v7 = vld [vmem:[%s794_s1 + $0x30] sm:$0xff]   ;;  %v614_v8 = vld [vmem:[%s794_s1 + $0x38] sm:$0xff]  }
   0x4   :  { %555 = vmatprep.subr.bf16.mxu0 %v608_v1  ;;  %v616_v9 = vld [vmem:[%s795_s0 + $0x8] sm:$0xff]   ;;  %v617_v10 = vld [vmem:[%s795_s0 + $0x10] sm:$0xff]   ;;  %v618_v11 = vld [vmem:[%s795_s0 + $0x18] sm:$0xff]  }
   0x5   :  { %v619_v12 = vld [vmem:[%s795_s0 + $0x20] sm:$0xff]   ;;  %v620_v13 = vld [vmem:[%s795_s0 + $0x28] sm:$0xff]   ;;  %v621_v14 = vld [vmem:[%s795_s0 + $0x30] sm:$0xff]  }
   0x6   :  { %v622_v15 = vld [vmem:[%s795_s0 + $0x38] sm:$0xff]   ;;  %v623_v16 = vld [vmem:[%s796_s4] sm:$0xff]   ;;  %v624_v18 = vld [vmem:[%s796_s4 + $0x8] sm:$0xff]  }
   0x7   :  { %556 = vmatpush3.bf16.msra.mxu0 %v608_v1  ;;  %586 = vmatpush3.bf16.msra.mxu1 %v623_v16  ;;  %v625_v19 = vld [vmem:[%s796_s4 + $0x10] sm:$0xff]   ;;  %v626_v20 = vld [vmem:[%s796_s4 + $0x18] sm:$0xff]   ;;  %v627_v21 = vld [vmem:[%s796_s4 + $0x20] sm:$0xff]  }
   0x8   :  { %557 = vmatprep.subr.bf16.mxu0 %v609_v2  ;;  %587 = vmatprep.subr.bf16.mxu1 %v631_v17  ;;  %v628_v22 = vld [vmem:[%s796_s4 + $0x28] sm:$0xff]   ;;  %v629_v23 = vld [vmem:[%s796_s4 + $0x30] sm:$0xff]   ;;  %v630_v24 = vld [vmem:[%s796_s4 + $0x38] sm:$0xff]  }
   0x9   :  { %v743_v25 = vld [vmem:[%s797_s2] ss:$0 sm:$0xff]  ;;  %v756_v36 = vld [vmem:[%s798_s3 + $0x8] sm:$0xff] }
   0xa   :  { %v751_v34 = vld [vmem:[%s798_s3] sm:$0xff] }
   0xb   :  { %558 = vmatpush3.bf16.msra.mxu0 %v609_v2  ;;  %588 = vmatpush3.bf16.msra.mxu1 %v624_v18 }
   0xc   :  { %559 = vmatprep.subr.bf16.mxu0 %v610_v3  ;;  %589 = vmatprep.subr.bf16.mxu1 %v631_v17 }
   0xf   :  { %560 = vmatpush3.bf16.msra.mxu0 %v610_v3  ;;  %590 = vmatpush3.bf16.msra.mxu1 %v625_v19 }
  0x10   :  { %561 = vmatprep.subr.bf16.mxu0 %v611_v5  ;;  %591 = vmatprep.subr.bf16.mxu1 %v631_v17 }
  0x13   :  { %562 = vmatpush3.bf16.msra.mxu0 %v611_v5  ;;  %592 = vmatpush3.bf16.msra.mxu1 %v626_v20 }
  0x14   :  { %563 = vmatprep.subr.bf16.mxu0 %v612_v6  ;;  %593 = vmatprep.subr.bf16.mxu1 %v631_v17 }
  0x17   :  { %564 = vmatpush3.bf16.msra.mxu0 %v612_v6  ;;  %594 = vmatpush3.bf16.msra.mxu1 %v627_v21 }
  0x18   :  { %565 = vmatprep.subr.bf16.mxu0 %v613_v7  ;;  %595 = vmatprep.subr.bf16.mxu1 %v631_v17 }
  0x1b   :  { %566 = vmatpush3.bf16.msra.mxu0 %v613_v7  ;;  %596 = vmatpush3.bf16.msra.mxu1 %v628_v22 }
  0x1c   :  { %567 = vmatprep.subr.bf16.mxu0 %v614_v8  ;;  %597 = vmatprep.subr.bf16.mxu1 %v631_v17 }
  0x1f   :  { %568 = vmatpush3.bf16.msra.mxu0 %v614_v8  ;;  %598 = vmatpush3.bf16.msra.mxu1 %v629_v23 }
  0x20   :  { %599 = vmatprep.subr.bf16.mxu1 %v631_v17 }
  0x22   :  { %570 = vmatmul.mubr.bf16.vlgmr.msra.gmra.mrb[0].mxu0 %v616_v9 }
  0x23   :  { %573 = vmatprep.mubr.bf16.mxu0 %v617_v10  ;;  %600 = vmatpush3.bf16.msra.mxu1 %v630_v24 }
  0x2a   :  { %574 = vmatmul.mubr.bf16.gmra.mrb[4].mxu0 %v618_v11 }
  0x2b   :  { %577 = vmatprep.mubr.bf16.mxu0 %v619_v12 }
  0x32   :  { %578 = vmatmul.mubr.bf16.gmra.mrb[8].mxu0 %v620_v13 }
  0x33   :  { %581 = vmatprep.mubr.bf16.mxu0 %v621_v14 }
  0x3a   :  { %582 = vmatmul.mubr.bf16.gmra.mrb[12].mxu0 %v622_v15 }
  0xf5   :  { %v571_v26 = vpop.f32.mrb[0].mxu0 }
  0xf6   :  { %v202_v27 = vadd.f32 %v571_v26, %v743_v25  ;;  %v193_v28 = vpop.f32.mrb[1].mxu0 }
  0xf7   :  { %v194_v29 = vadd.f32 %v743_v25, %v193_v28  ;;  %v572_v30 = vpop.f32.mrb[2].mxu0 }
  0xf8   :  { %v258_v31 = vmax.f32 %v202_v27, 0.0  ;;  %v205_v32 = vadd.f32 %v572_v30, %v743_v25  ;;  %v196_v33 = vpop.f32.mrb[3].mxu0 }
  0xf9   :  { %v256_v35 = vmax.f32 %v194_v29, 0.0  ;;  %v197_v37 = vadd.f32 %v743_v25, %v196_v33 }
  0xfa   :  { %v259_v38 = vmax.f32 %v205_v32, 0.0  ;;  %v276_v40 = vmul.f32 %v751_v34, %v258_v31 }
  0xfb   :  { %v257_v39 = vmax.f32 %v197_v37, 0.0  ;;  %v274_v42 = vmul.f32 %v751_v34, %v256_v35 }
  0xfc   :  { %v277_v41 = vmul.f32 %v756_v36, %v259_v38 }
  0xfd   :  { %v275_v43 = vmul.f32 %v756_v36, %v257_v39  ;;  %v575_v44 = vpop.f32.mrb[4].mxu0 }
  0xfe   :  { %v297_v45 = vmax.f32 %v276_v40, %v277_v41  ;;  %v218_v46 = vadd.f32 %v575_v44, %v743_v25  ;;  %v209_v47 = vpop.f32.mrb[5].mxu0 }
  0xff   :  { %v290_v48 = vmax.f32 %v274_v42, %v275_v43  ;;  %v210_v49 = vadd.f32 %v743_v25, %v209_v47  ;;  %v576_v50 = vpop.f32.mrb[6].mxu0 }
 0x100   :  { %v298_v51 = vrot.slane %v297_v45, 4  ;;  %v262_v52 = vmax.f32 %v218_v46, 0.0  ;;  %v221_v53 = vadd.f32 %v576_v50, %v743_v25  ;;  %v212_v54 = vpop.f32.mrb[7].mxu0 }
 0x101   :  { %v291_v55 = vrot.slane %v290_v48, 4  ;;  %v260_v56 = vmax.f32 %v210_v49, 0.0  ;;  %v213_v57 = vadd.f32 %v743_v25, %v212_v54 }
 0x102   :  { %v299_v58 = vmax.f32 %v297_v45, %v298_v51  ;;  %v263_v59 = vmax.f32 %v221_v53, 0.0  ;;  %v280_v63 = vmul.f32 %v751_v34, %v262_v52 }
 0x103   :  { %v292_v60 = vmax.f32 %v290_v48, %v291_v55  ;;  %v261_v61 = vmax.f32 %v213_v57, 0.0  ;;  %v278_v2 = vmul.f32 %v751_v34, %v260_v56 }
 0x104   :  { %v300_v62 = vrot.slane %v299_v58, 2  ;;  %v281_v0 = vmul.f32 %v756_v36, %v263_v59 }
 0x105   :  { %v293_v1 = vrot.slane %v292_v60, 2  ;;  %v279_v3 = vmul.f32 %v756_v36, %v261_v61  ;;  %v579_v4 = vpop.f32.mrb[8].mxu0 }
 0x106   :  { %v301_v5 = vmax.f32 %v299_v58, %v300_v62  ;;  %v311_v6 = vmax.f32 %v280_v63, %v281_v0  ;;  %v234_v7 = vadd.f32 %v579_v4, %v743_v25  ;;  %v225_v8 = vpop.f32.mrb[9].mxu0 }
 0x107   :  { %v294_v9 = vmax.f32 %v292_v60, %v293_v1  ;;  %v304_v10 = vmax.f32 %v278_v2, %v279_v3  ;;  %v226_v11 = vadd.f32 %v743_v25, %v225_v8  ;;  %v580_v12 = vpop.f32.mrb[10].mxu0 }
 0x108   :  { %v302_v13 = vrot.slane %v301_v5, 1  ;;  %v312_v14 = vrot.slane %v311_v6, 4  ;;  %v266_v15 = vmax.f32 %v234_v7, 0.0  ;;  %v237_v16 = vadd.f32 %v580_v12, %v743_v25  ;;  %v228_v17 = vpop.f32.mrb[11].mxu0 }
 0x109   :  { %v295_v18 = vrot.slane %v294_v9, 1  ;;  %v305_v19 = vrot.slane %v304_v10, 4  ;;  %v264_v20 = vmax.f32 %v226_v11, 0.0  ;;  %v229_v21 = vadd.f32 %v743_v25, %v228_v17 }
 0x10a   :  { %v303_v22 = vmax.f32 %v301_v5, %v302_v13  ;;  %v313_v23 = vmax.f32 %v311_v6, %v312_v14  ;;  %v267_v24 = vmax.f32 %v237_v16, 0.0  ;;  %v284_v31 = vmul.f32 %v751_v34, %v266_v15 }
 0x10b   :  { %v296_v26 = vmax.f32 %v294_v9, %v295_v18  ;;  %v306_v27 = vmax.f32 %v304_v10, %v305_v19  ;;  %v265_v28 = vmax.f32 %v229_v21, 0.0  ;;  %v282_v37 = vmul.f32 %v751_v34, %v264_v20 }
 0x10c   :  { %v347_v29 = vpack.c.bf16 %v303_v22, %v303_v22  ;;  %v314_v30 = vrot.slane %v313_v23, 2  ;;  %v285_v32 = vmul.f32 %v756_v36, %v267_v24 }
 0x10d   :  { %v346_v33 = vpack.c.bf16 %v296_v26, %v296_v26  ;;  %v307_v35 = vrot.slane %v306_v27, 2  ;;  %v283_v38 = vmul.f32 %v756_v36, %v265_v28  ;;  %v583_v39 = vpop.f32.mrb[12].mxu0 }
 0x10e   :  { %v386_v40 = vunpack.c.l.b16 %v347_v29  ;;  %v315_v41 = vmax.f32 %v313_v23, %v314_v30  ;;  %v325_v42 = vmax.f32 %v284_v31, %v285_v32  ;;  %v250_v43 = vadd.f32 %v583_v39, %v743_v25  ;;  %v241_v44 = vpop.f32.mrb[13].mxu0 }
 0x10f   :  { %v385_v45 = vunpack.c.l.b16 %v346_v33  ;;  %v308_v46 = vmax.f32 %v306_v27, %v307_v35  ;;  %v318_v47 = vmax.f32 %v282_v37, %v283_v38  ;;  %v242_v48 = vadd.f32 %v743_v25, %v241_v44  ;;  %v584_v49 = vpop.f32.mrb[14].mxu0 }
 0x110   :  { %v316_v50 = vrot.slane %v315_v41, 1  ;;  %v326_v51 = vrot.slane %v325_v42, 4  ;;  %v270_v52 = vmax.f32 %v250_v43, 0.0  ;;  %v253_v53 = vadd.f32 %v584_v49, %v743_v25  ;;  %v244_v54 = vpop.f32.mrb[15].mxu0 }
 0x111   :  { %v394_v55 = vsel %vm393_vm1, %v386_v40, %v385_v45  ;;  %v309_v56 = vrot.slane %v308_v46, 1  ;;  %v319_v57 = vrot.slane %v318_v47, 4  ;;  %v268_v63 = vmax.f32 %v242_v48, 0.0 }
 0x112   :  { %v317_v58 = vmax.f32 %v315_v41, %v316_v50  ;;  %v327_v59 = vmax.f32 %v325_v42, %v326_v51  ;;  %v271_v60 = vmax.f32 %v253_v53, 0.0  ;;  %v245_v0 = vadd.f32 %v743_v25, %v244_v54 }
 0x113   :  { %v310_v61 = vmax.f32 %v308_v46, %v309_v56  ;;  %v320_v62 = vmax.f32 %v318_v47, %v319_v57  ;;  %v288_v3 = vmul.f32 %v751_v34, %v270_v52  ;;  %v286_v12 = vmul.f32 %v751_v34, %v268_v63  ;;  %v519_v47 = vld [vmem:[%s799_s5] ss:$0 sm:$0xff] }
 0x114   :  { %v349_v1 = vpack.c.bf16 %v317_v58, %v317_v58  ;;  %v328_v2 = vrot.slane %v327_v59, 2  ;;  %v289_v4 = vmul.f32 %v756_v36, %v271_v60  ;;  %v269_v7 = vmax.f32 %v245_v0, 0.0 }
 0x115   :  { %v348_v5 = vpack.c.bf16 %v310_v61, %v310_v61  ;;  %v321_v6 = vrot.slane %v320_v62, 2 }
 0x116   :  { %v329_v8 = vmax.f32 %v327_v59, %v328_v2  ;;  %v339_v9 = vmax.f32 %v288_v3, %v289_v4  ;;  %v287_v13 = vmul.f32 %v756_v36, %v269_v7  ;;  %v388_v25 = vunpack.c.l.b16 %v349_v1 }
 0x117   :  { %v387_v10 = vunpack.c.l.b16 %v348_v5  ;;  %v322_v11 = vmax.f32 %v320_v62, %v321_v6 }
 0x118   :  { %v330_v14 = vrot.slane %v329_v8, 1  ;;  %v340_v15 = vrot.slane %v339_v9, 4  ;;  %v332_v17 = vmax.f32 %v286_v12, %v287_v13 }
 0x119   :  { %v323_v16 = vrot.slane %v322_v11, 1  ;;  %v396_v18 = vsel %vm395_vm2, %v387_v10, %v394_v55 }
 0x11a   :  { %v331_v19 = vmax.f32 %v329_v8, %v330_v14  ;;  %v341_v20 = vmax.f32 %v339_v9, %v340_v15  ;;  %v398_v21 = vsel %vm397_vm3, %v388_v25, %v396_v18  ;;  %v333_v23 = vrot.slane %v332_v17, 4 }
 0x11b   :  { %v324_v22 = vmax.f32 %v322_v11, %v323_v16 }
 0x11c   :  { %v351_v24 = vpack.c.bf16 %v331_v19, %v331_v19  ;;  %v342_v26 = vrot.slane %v341_v20, 2  ;;  %v334_v28 = vmax.f32 %v332_v17, %v333_v23 }
 0x11d   :  { %v350_v27 = vpack.c.bf16 %v324_v22, %v324_v22 }
 0x11e   :  { %v343_v29 = vmax.f32 %v341_v20, %v342_v26  ;;  %v335_v30 = vrot.slane %v334_v28, 2  ;;  %v390_v36 = vunpack.c.l.b16 %v351_v24 }
 0x11f   :  { %v389_v34 = vunpack.c.l.b16 %v350_v27 }
 0x120   :  { %v344_v31 = vrot.slane %v343_v29, 1  ;;  %v336_v32 = vmax.f32 %v334_v28, %v335_v30 }
 0x121   :  { %v400_v33 = vsel %vm399_vm4, %v389_v34, %v398_v21 }
 0x122   :  { %v345_v35 = vmax.f32 %v343_v29, %v344_v31  ;;  %v402_v37 = vsel %vm401_vm5, %v390_v36, %v400_v33  ;;  %v337_v38 = vrot.slane %v336_v32, 1 }
 0x124   :  { %v338_v39 = vmax.f32 %v336_v32, %v337_v38  ;;  %v353_v40 = vpack.c.bf16 %v345_v35, %v345_v35 }
 0x126   :  { %v352_v41 = vpack.c.bf16 %v338_v39, %v338_v39  ;;  %v392_v43 = vunpack.c.l.b16 %v353_v40 }
 0x128   :  { %v391_v42 = vunpack.c.l.b16 %v352_v41 }
 0x12a   :  { %v404_v44 = vsel %vm403_vm6, %v391_v42, %v402_v37 }
 0x12b   :  { %v406_v45 = vsel %vm405_vm7, %v392_v43, %v404_v44 }
 0x12c   :  { %v407_v46 = vpack.c.b16 %v406_v45, %v406_v45 }
 0x12e   :  { %602 = vmatmul.mubr.bf16.vlgmr.msra.gmra.mrb[0].mxu1 %v407_v46 }
 0x201   :  { %v491_v48 = vpop.f32.mrb[0].mxu1 }
 0x202   :  { %v492_v49 = vadd.f32 %v519_v47, %v491_v48  ;;  %v603_v50 = vpop.f32.mrb[1].mxu1 }
 0x203   :  { %v494_v51 = vpop.f32.mrb[2].mxu1 }
 0x204   :  { %497 = vst [vmem:[%s800_s6] sm:$0xff] %v492_v49  ;;  %v604_v52 = vpop.f32.mrb[3].mxu1 }

</bundles_post_ra>
